<compile_context>
chip_gen: v7x
topology: tpu7x:2x2x1
jax: 0.10.0
libtpu: 0.0.40
codegen_flags: <defaults>
</compile_context>

<pallas_src>
import functools

import jax
import jax.numpy as jnp
from jax import lax
from jax.experimental import pallas as pl
from jax.experimental.pallas import tpu as pltpu


def _round_up(x, m):
    return (x + m - 1) // m * m


def critic_twin_kernel(s_ref, a_ref, w0s_ref, w0a_ref, b0_ref,
                       w1_ref, b1_ref, wqm_ref, bqm_ref, o_ref):
    # Layer 0: Linear over cat(state, action), expressed as two dots (no concat).
    h = (jnp.dot(s_ref[...], w0s_ref[...], preferred_element_type=jnp.float32)
         + jnp.dot(a_ref[...], w0a_ref[...], preferred_element_type=jnp.float32)
         + b0_ref[...])
    h = jnp.maximum(h, 0.0)
    # Layer 1: Linear + ReLU.
    h = jnp.dot(h, w1_ref[...], preferred_element_type=jnp.float32) + b1_ref[...]
    h = jnp.maximum(h, 0.0)
    # Final Linear fused with the ensemble mean (folded on the host into wqm).
    # Contract both operands on their last dim so the result comes out as a
    # lane-dense (1, tb) row: full-width unmasked stores + dense writeback DMA
    # instead of a 1-lane-wide (tb, 1) masked store.
    q_row = lax.dot_general(wqm_ref[...], h, (((1,), (1,)), ((), ())),
                            preferred_element_type=jnp.float32)      # (1, tb)
    o_ref[0] = q_row + bqm_ref[0, 0]


@functools.partial(jax.jit, static_argnames=("tile_b",))
def critic_twin_forward(state, action, params, *, tile_b=2048):
    """CriticTwin.forward: mean over ensemble Q heads -> [batch, 1]."""
    w0, b0, w1, b1, wq, bq = params
    B, S = state.shape
    A = action.shape[1]
    H1 = w0.shape[1]
    H2 = w1.shape[1]

    # Host-side algebraic fusion: last Linear + mean over ensembles.
    w0s = w0[:S]                                # [S, H1]
    w0a = w0[S:]                                # [A, H1]
    wqm = jnp.mean(wq, axis=1)[None, :]         # [1, H2]  (row vector)
    bqm = jnp.mean(bq).reshape(1, 1)            # scalar -> SMEM

    # Tile selection (overhead-bound kernel):
    #   * big tiles (<= tile_b) to minimize grid steps,
    #   * >= 2 steps when the batch allows it so v7x's 2nd TensorCore engages,
    #   * tiles a multiple of 8 sublanes,
    #   * padding bounded by < one tile (no blind round-up to tile_b).
    n_steps = max(pl.cdiv(B, tile_b), 2 if B > 8 else 1)
    tb = _round_up(pl.cdiv(B, n_steps), 8)
    n_steps = pl.cdiv(B, tb)
    b_pad = n_steps * tb
    if b_pad != B:
        pad = ((0, b_pad - B), (0, 0))
        state = jnp.pad(state, pad)
        action = jnp.pad(action, pad)

    resident = lambda i: (0, 0)   # same block every step -> stays in VMEM

    flops = 2 * b_pad * (S * H1 + A * H1 + H1 * H2 + H2)
    bytes_accessed = 4 * (b_pad * (S + A + 1)
                          + (S + A) * H1 + H1 + H1 * H2 + H2 + H2 + 1)

    out = pl.pallas_call(
        critic_twin_kernel,
        out_shape=jax.ShapeDtypeStruct((n_steps, 1, tb), jnp.float32),
        grid=(n_steps,),
        in_specs=[
            pl.BlockSpec((tb, S), lambda i: (i, 0)),   # state tile
            pl.BlockSpec((tb, A), lambda i: (i, 0)),   # action tile
            pl.BlockSpec((S, H1), resident),           # w0 (state part)
            pl.BlockSpec((A, H1), resident),           # w0 (action part)
            pl.BlockSpec((1, H1), resident),           # b0
            pl.BlockSpec((H1, H2), resident),          # w1
            pl.BlockSpec((1, H2), resident),           # b1
            pl.BlockSpec((1, H2), resident),           # wq folded with ensemble mean
            pl.BlockSpec(memory_space=pltpu.MemorySpace.SMEM),  # folded bias scalar
        ],
        out_specs=pl.BlockSpec((1, 1, tb), lambda i: (i, 0, 0)),
        compiler_params=pltpu.CompilerParams(
            dimension_semantics=("parallel",)),
        cost_estimate=pl.CostEstimate(
            flops=flops, transcendentals=0, bytes_accessed=bytes_accessed),
    )(state, action, w0s, w0a, b0, w1, b1, wqm, bqm)
    # (n_steps, 1, tb) flattens row-major back into batch order.
    return out.reshape(b_pad, 1)[:B]


def init_params(key, state_dim, action_dim, net_dims, num_ensembles):
    """Synthetic deterministic init matching CriticTwin's layer shapes.

    Weights are stored as [in_features, out_features] so y = x @ W + b.
    (The exact PyTorch init — orthogonal last layer, etc. — is irrelevant to
    kernel semantics; only shapes matter here.)
    """
    dims = [state_dim + action_dim, *net_dims, num_ensembles]
    params = []
    for i in range(len(dims) - 1):
        fan_in, fan_out = dims[i], dims[i + 1]
        key, k_w, k_b = jax.random.split(key, 3)
        bound = 1.0 / float(jnp.sqrt(fan_in))
        w = jax.random.uniform(k_w, (fan_in, fan_out), jnp.float32, -bound, bound)
        b = jax.random.uniform(k_b, (1, fan_out), jnp.float32, -bound, bound)
        params.extend([w, b])
    return tuple(params)


def critic_twin_ref(state, action, params):
    """Pure-JAX reference (matches the PyTorch forward exactly)."""
    w0, b0, w1, b1, wq, bq = params
    x = jnp.concatenate([state, action], axis=1)
    h = jnp.maximum(x @ w0 + b0, 0.0)
    h = jnp.maximum(h @ w1 + b1, 0.0)
    q = h @ wq + bq
    return jnp.mean(q, axis=-1, keepdims=True)


if __name__ == "__main__":
    key = jax.random.PRNGKey(0)
    batch, state_dim, action_dim, num_ensembles = 2, 8, 4, 8
    net_dims = [32, 32]

    k_s, k_a, k_p = jax.random.split(key, 3)
    state = jax.random.normal(k_s, (batch, state_dim), jnp.float32)
    action = jax.random.normal(k_a, (batch, action_dim), jnp.float32)
    params = init_params(k_p, state_dim, action_dim, net_dims, num_ensembles)

    out = critic_twin_forward(state, action, params)
    out = jax.block_until_ready(out)
    ref = critic_twin_ref(state, action, params)
    assert out.shape == (batch, 1)
    assert jnp.allclose(out, ref, atol=1e-5, rtol=1e-4)

    # Exercise the multi-step / padded path with a larger non-aligned batch
    # (2 grid steps, tile of 504 rows, 8 padded rows sliced off).
    big = 1000
    k_s2, k_a2 = jax.random.split(jax.random.fold_in(key, 7))
    state_b = jax.random.normal(k_s2, (big, state_dim), jnp.float32)
    action_b = jax.random.normal(k_a2, (big, action_dim), jnp.float32)
    out_b = jax.block_until_ready(critic_twin_forward(state_b, action_b, params))
    ref_b = critic_twin_ref(state_b, action_b, params)
    assert out_b.shape == (big, 1)
    assert jnp.allclose(out_b, ref_b, atol=1e-5, rtol=1e-4)

    # TODO(synk): get_q_values (per-ensemble output [B, num_ensembles]) is not
    # kernelized; forward() only needs the ensemble mean, which is folded into
    # the final weights.
    print("KERNEL_OK")
</pallas_src>

<mosaic_0001>
module attributes {stable_mosaic.version = 11 : i64} {
  func.func @critic_twin_kernel(%arg0: i32, %arg1: memref<8x8xf32, #tpu.memory_space<vmem>>, %arg2: memref<8x4xf32, #tpu.memory_space<vmem>>, %arg3: memref<8x32xf32, #tpu.memory_space<vmem>>, %arg4: memref<4x32xf32, #tpu.memory_space<vmem>>, %arg5: memref<1x32xf32, #tpu.memory_space<vmem>>, %arg6: memref<32x32xf32, #tpu.memory_space<vmem>>, %arg7: memref<1x32xf32, #tpu.memory_space<vmem>>, %arg8: memref<1x32xf32, #tpu.memory_space<vmem>>, %arg9: memref<1x1xf32, #tpu.memory_space<smem>>, %arg10: memref<1x1x8xf32, #tpu.memory_space<vmem>>) attributes {dimension_semantics = [#tpu.dimension_semantics<parallel>], iteration_bounds = array<i64: 1>, scalar_prefetch = 0 : i64, scratch_operands = 0 : i64, tpu.core_type = #tpu.core_type<tc>, window_params = [{transform_indices = @transform_0, window_bounds = array<i64: 8, 8>}, {transform_indices = @transform_1, window_bounds = array<i64: 8, 4>}, {pipeline_mode = #tpu.pipeline_mode<synchronous>, transform_indices = @transform_2, window_bounds = array<i64: 8, 32>}, {pipeline_mode = #tpu.pipeline_mode<synchronous>, transform_indices = @transform_3, window_bounds = array<i64: 4, 32>}, {pipeline_mode = #tpu.pipeline_mode<synchronous>, transform_indices = @transform_4, window_bounds = array<i64: 1, 32>}, {pipeline_mode = #tpu.pipeline_mode<synchronous>, transform_indices = @transform_5, window_bounds = array<i64: 32, 32>}, {pipeline_mode = #tpu.pipeline_mode<synchronous>, transform_indices = @transform_6, window_bounds = array<i64: 1, 32>}, {pipeline_mode = #tpu.pipeline_mode<synchronous>, transform_indices = @transform_7, window_bounds = array<i64: 1, 32>}, {transform_indices = @transform_8, window_bounds = array<i64: 1, 1>}, {transform_indices = @transform_9, window_bounds = array<i64: 1, 1, 8>}]} {
    %c0 = arith.constant 0 : index
    %c0_0 = arith.constant 0 : index
    %0 = vector.load %arg1[%c0, %c0_0] : memref<8x8xf32, #tpu.memory_space<vmem>>, vector<8x8xf32>
    %c0_1 = arith.constant 0 : index
    %c0_2 = arith.constant 0 : index
    %1 = vector.load %arg3[%c0_1, %c0_2] : memref<8x32xf32, #tpu.memory_space<vmem>>, vector<8x32xf32>
    %cst = arith.constant dense<0.000000e+00> : vector<8x32xf32>
    %2 = tpu.matmul %0, %1, %cst {dimension_numbers = #tpu.dot_dimension_numbers<[1], [0], [0], [1], [0, 0, 1, 1], [], []>} : vector<8x8xf32>, vector<8x32xf32>, vector<8x32xf32> -> vector<8x32xf32>
    %c0_3 = arith.constant 0 : index
    %c0_4 = arith.constant 0 : index
    %3 = vector.load %arg2[%c0_3, %c0_4] : memref<8x4xf32, #tpu.memory_space<vmem>>, vector<8x4xf32>
    %c0_5 = arith.constant 0 : index
    %c0_6 = arith.constant 0 : index
    %4 = vector.load %arg4[%c0_5, %c0_6] : memref<4x32xf32, #tpu.memory_space<vmem>>, vector<4x32xf32>
    %cst_7 = arith.constant dense<0.000000e+00> : vector<8x32xf32>
    %5 = tpu.matmul %3, %4, %cst_7 {dimension_numbers = #tpu.dot_dimension_numbers<[1], [0], [0], [1], [0, 0, 1, 1], [], []>} : vector<8x4xf32>, vector<4x32xf32>, vector<8x32xf32> -> vector<8x32xf32>
    %6 = arith.addf %2, %5 : vector<8x32xf32>
    %c0_8 = arith.constant 0 : index
    %c0_9 = arith.constant 0 : index
    %7 = vector.load %arg5[%c0_8, %c0_9] : memref<1x32xf32, #tpu.memory_space<vmem>>, vector<1x32xf32>
    %8 = vector.broadcast %7 : vector<1x32xf32> to vector<8x32xf32>
    %9 = arith.addf %6, %8 : vector<8x32xf32>
    %cst_10 = arith.constant 0.000000e+00 : f32
    %10 = vector.broadcast %cst_10 : f32 to vector<8x32xf32>
    %11 = arith.maximumf %9, %10 : vector<8x32xf32>
    %c0_11 = arith.constant 0 : index
    %c0_12 = arith.constant 0 : index
    %12 = vector.load %arg6[%c0_11, %c0_12] : memref<32x32xf32, #tpu.memory_space<vmem>>, vector<32x32xf32>
    %cst_13 = arith.constant dense<0.000000e+00> : vector<8x32xf32>
    %13 = tpu.matmul %11, %12, %cst_13 {dimension_numbers = #tpu.dot_dimension_numbers<[1], [0], [0], [1], [0, 0, 1, 1], [], []>} : vector<8x32xf32>, vector<32x32xf32>, vector<8x32xf32> -> vector<8x32xf32>
    %c0_14 = arith.constant 0 : index
    %c0_15 = arith.constant 0 : index
    %14 = vector.load %arg7[%c0_14, %c0_15] : memref<1x32xf32, #tpu.memory_space<vmem>>, vector<1x32xf32>
    %15 = vector.broadcast %14 : vector<1x32xf32> to vector<8x32xf32>
    %16 = arith.addf %13, %15 : vector<8x32xf32>
    %cst_16 = arith.constant 0.000000e+00 : f32
    %17 = vector.broadcast %cst_16 : f32 to vector<8x32xf32>
    %18 = arith.maximumf %16, %17 : vector<8x32xf32>
    %c0_17 = arith.constant 0 : index
    %c0_18 = arith.constant 0 : index
    %19 = vector.load %arg8[%c0_17, %c0_18] : memref<1x32xf32, #tpu.memory_space<vmem>>, vector<1x32xf32>
    %cst_19 = arith.constant dense<0.000000e+00> : vector<1x8xf32>
    %20 = tpu.matmul %19, %18, %cst_19 {dimension_numbers = #tpu.dot_dimension_numbers<[1], [1], [0], [0], [0, 0, 1, 0], [], []>} : vector<1x32xf32>, vector<8x32xf32>, vector<1x8xf32> -> vector<1x8xf32>
    %c0_20 = arith.constant 0 : index
    %c0_21 = arith.constant 0 : index
    %21 = memref.load %arg9[%c0_20, %c0_21] : memref<1x1xf32, #tpu.memory_space<smem>>
    %22 = vector.broadcast %21 : f32 to vector<1x8xf32>
    %23 = arith.addf %20, %22 : vector<1x8xf32>
    %c0_22 = arith.constant 0 : index
    %c0_23 = arith.constant 0 : index
    %c0_24 = arith.constant 0 : index
    %24 = vector.load %arg10[%c0_22, %c0_23, %c0_24] : memref<1x1x8xf32, #tpu.memory_space<vmem>>, vector<1x1x8xf32>
    %25 = vector.shape_cast %24 : vector<1x1x8xf32> to vector<1x8xf32>
    %26 = vector.shape_cast %23 : vector<1x8xf32> to vector<1x1x8xf32>
    tpu.vector_store %arg10[%c0_22, %c0_23, %c0_24], %26 {strides = array<i32>} : memref<1x1x8xf32, #tpu.memory_space<vmem>>, vector<1x1x8xf32>,
    return
  }
  func.func @transform_0(%arg0: i32) -> (i32, i32) {
    %c0_i32 = arith.constant 0 : i32
    %c0_i32_0 = arith.constant 0 : i32
    return %arg0, %c0_i32 : i32, i32
  }
  func.func @transform_1(%arg0: i32) -> (i32, i32) {
    %c0_i32 = arith.constant 0 : i32
    %c0_i32_0 = arith.constant 0 : i32
    return %arg0, %c0_i32 : i32, i32
  }
  func.func @transform_2(%arg0: i32) -> (i32, i32) {
    %c0_i32 = arith.constant 0 : i32
    %c0_i32_0 = arith.constant 0 : i32
    %c0_i32_1 = arith.constant 0 : i32
    return %c0_i32, %c0_i32_0 : i32, i32
  }
  func.func @transform_3(%arg0: i32) -> (i32, i32) {
    %c0_i32 = arith.constant 0 : i32
    %c0_i32_0 = arith.constant 0 : i32
    %c0_i32_1 = arith.constant 0 : i32
    return %c0_i32, %c0_i32_0 : i32, i32
  }
  func.func @transform_4(%arg0: i32) -> (i32, i32) {
    %c0_i32 = arith.constant 0 : i32
    %c0_i32_0 = arith.constant 0 : i32
    %c0_i32_1 = arith.constant 0 : i32
    return %c0_i32, %c0_i32_0 : i32, i32
  }
  func.func @transform_5(%arg0: i32) -> (i32, i32) {
    %c0_i32 = arith.constant 0 : i32
    %c0_i32_0 = arith.constant 0 : i32
    %c0_i32_1 = arith.constant 0 : i32
    return %c0_i32, %c0_i32_0 : i32, i32
  }
  func.func @transform_6(%arg0: i32) -> (i32, i32) {
    %c0_i32 = arith.constant 0 : i32
    %c0_i32_0 = arith.constant 0 : i32
    %c0_i32_1 = arith.constant 0 : i32
    return %c0_i32, %c0_i32_0 : i32, i32
  }
  func.func @transform_7(%arg0: i32) -> (i32, i32) {
    %c0_i32 = arith.constant 0 : i32
    %c0_i32_0 = arith.constant 0 : i32
    %c0_i32_1 = arith.constant 0 : i32
    return %c0_i32, %c0_i32_0 : i32, i32
  }
  func.func @transform_8(%arg0: i32) -> (i32, i32) {
    %c0_i32 = arith.constant 0 : i32
    %c0_i32_0 = arith.constant 0 : i32
    %c0_i32_1 = arith.constant 0 : i32
    return %c0_i32, %c0_i32_0 : i32, i32
  }
  func.func @transform_9(%arg0: i32) -> (i32, i32, i32) {
    %c0_i32 = arith.constant 0 : i32
    %c0_i32_0 = arith.constant 0 : i32
    %c0_i32_1 = arith.constant 0 : i32
    return %arg0, %c0_i32, %c0_i32_0 : i32, i32, i32
  }
}

</mosaic_0001>

<bundles_post_ra>
// kernel: critic_twin_forward.1
= control target key start
LH: loop header
LB: loop body
LE: loop exit
PB: predicated region body
PF: predicated region fallthrough
CT: control target
= control target key end

     0   :  { %vm41_vm0 = vcmask 1043456   ;;  %v423_v0 = vmov 0.0   ;;  %vm37_vm1 = vcmask 31744   ;;  %vm115_vm2 = vcmask 64512   ;;  %s515_s3 = inlined_call_operand.vmem [shape: f32[4,32], index: 3, kind: input, shape index: {}]   ;;  %s516_s2 = inlined_call_operand.vmem [shape: f32[8,32], index: 2, kind: input, shape index: {}]   ;;  %s517_s1 = inlined_call_operand.vmem [shape: f32[8,4], index: 1, kind: input, shape index: {}]   ;;  %s518_s0 = inlined_call_operand.vmem [shape: f32[8,8], index: 0, kind: input, shape index: {}]   ;;  %s519_s5 = inlined_call_operand.vmem [shape: f32[32,32], index: 5, kind: input, shape index: {}]   ;;  %s520_s4 = inlined_call_operand.vmem [shape: f32[1,32], index: 4, kind: input, shape index: {}]   ;;  %s521_s6 = inlined_call_operand.vmem [shape: f32[1,32], index: 6, kind: input, shape index: {}]   ;;  %s522_s7 = inlined_call_operand.vmem [shape: f32[1,32], index: 7, kind: input, shape index: {}]   ;;  %s523_s8 = inlined_call_operand.<no memory space> [shape: f32[1,1], index: 8, kind: input, shape index: {}]   ;;  %s524_s9 = inlined_call_operand.vmem [shape: f32[1,1,8], index: 9, kind: output, shape index: {}]  }
   0x1   :  { %388 = vmatprep.subr.mxu0 %v423_v0  ;;  %393 = vmatprep.subr.mxu1 %v423_v0  ;;  %v36_v1 = vld [vmem:[%s515_s3] sm:$0xf]  ;;  %vm424_vm3 = vmmov 0   ;;  %v425_v5 = vmov 0.0|0.0   ;;  %v199_v7 = vld [vmem:[%s519_s5 + $0x8] sm:$0xff]  ;;  %v200_v9 = vld [vmem:[%s519_s5 + $0x10] sm:$0xff]  ;;  %v286_v26 = vstv %s523_s8 }
   0x2   :  { %v34_v2 = vld [vmem:[%s516_s2] sm:$0xff]  ;;  %389 = vmatpush3.msk.msra.mxu0 %vm41_vm0, %v36_v1  ;;  %390 = vmatprep.mubr.msk.f32.mxu0 %vm424_vm3, %v423_v0  ;;  %v201_v10 = vld [vmem:[%s519_s5 + $0x18] sm:$0xff]  ;;  %vm209_vm4 = vcmask 261120   ;;  %vm363_vm5 = vcmask 57344  }
   0x3   :  { %v35_v3 = vld [vmem:[%s517_s1] sm:$0xff]  ;;  %394 = vmatpush3.msra.mxu1 %v34_v2  ;;  %395 = vmatprep.mubr.msk.f32.mxu1 %vm424_vm3, %v423_v0  ;;  %v418_v11 = vpack.c.bf16 %v201_v10, %v200_v9 }
   0x4   :  { %v33_v4 = vld [vmem:[%s518_s0] sm:$0xff]  ;;  %391 = vmatmul.mubr.msk.f32.vlgmr.msra.gmra.mrb[0].mxu0 %vm37_vm1, %v35_v3  ;;  %414 = vmatprep.subr.bf16.mxu0 %v425_v5 }
   0x5   :  { %396 = vmatmul.mubr.msk.f32.vlgmr.msra.gmra.mrb[0].mxu1 %vm115_vm2, %v33_v4  ;;  %406 = vmatprep.mubr.msk.f32.mxu0 %vm424_vm3, %v423_v0  ;;  %v198_v6 = vld [vmem:[%s519_s5] sm:$0xff] }
   0x6   :  { %409 = vmatprep.subr.mxu1 %v423_v0  ;;  %411 = vmatprep.mubr.msk.f32.mxu1 %vm424_vm3, %v423_v0  ;;  %v415_v8 = vpack.c.bf16 %v199_v7, %v198_v6  ;;  %v372_v14 = vld [vmem:[%s520_s4] ss:$0 sm:$0xff] }
   0x7   :  { %v373_v20 = vld [vmem:[%s521_s6] ss:$0 sm:$0xff] }
   0x8   :  { %416 = vmatpush3.bf16.msra.mxu0 %v415_v8  ;;  %v284_v25 = vld [vmem:[%s522_s7] sm:$0x1] }
   0x9   :  { %417 = vmatprep.subr.bf16.mxu0 %v425_v5 }
   0xc   :  { %419 = vmatpush3.bf16.msra.mxu0 %v418_v11 }
  0xd7   :  { %v111_v12 = vpop.f32.mrb[0].mxu0 }
  0xd8   :  { %v185_v13 = vpop.f32.mrb[0].mxu1  ;;  %v392_v16 = vpop.f32.mrb[1].mxu0 }
  0xd9   :  { %v186_v15 = vadd.f32 %v185_v13, %v111_v12  ;;  %v397_v17 = vpop.f32.mrb[1].mxu1 }
  0xdb   :  { %v196_v18 = vadd.f32 %v372_v14, %v186_v15 }
  0xdd   :  { %v197_v19 = vmax.f32 %v196_v18, 0.0 }
  0xdf   :  { %407 = vmatmul.mubr.msk.f32.vlgmr.msra.gmra.mrb[2].mxu0 %vm209_vm4, %v197_v19 }
 0x1b2   :  { %v279_v21 = vpop.f32.mrb[2].mxu0 }
 0x1b3   :  { %v280_v22 = vadd.f32 %v373_v20, %v279_v21  ;;  %v408_v23 = vpop.f32.mrb[3].mxu0 }
 0x1b5   :  { %v283_v24 = vmax.f32 %v280_v22, 0.0 }
 0x1b7   :  { %410 = vmatpush3.xpose.msk.msra.mxu1 %vm209_vm4, %v283_v24 }
 0x1ba   :  { %412 = vmatmul.mubr.msk.f32.vlgmr.msra.gmra.mrb[2].mxu1 %vm209_vm4, %v284_v25 }
 0x28d   :  { %v359_v27 = vpop.f32.mrb[2].mxu1 }
 0x28e   :  { %v360_v28 = vadd.f32 %v359_v27, %v286_v26  ;;  %v413_v29 = vpop.f32.mrb[3].mxu1 }
 0x290   :  { %364 = vst.msk [vmem:[%s524_s9] sm:$0x1] %vm363_vm5, %v360_v28 }

</bundles_post_ra>
